<compile_context>
chip_gen: v7x
topology: tpu7x:2x2x1
jax: 0.10.0
libtpu: 0.0.40
codegen_flags: <defaults>
</compile_context>

<pallas_src>
import jax
import jax.numpy as jnp
from jax import lax
from jax.experimental import pallas as pl
from jax.experimental.pallas import tpu as pltpu


def mlp_kernel(x_ref, w1_ref, b1_ref, w2_ref, b2_ref, w3_ref, b3_ref, o_ref):
    # x, w1, w2, w3 are bf16 (MXU-native).  b1/b2 carry the epilogue dtype
    # (bf16 on v6e/v7x, f32 on v5e); b3 is f32.
    ep_dtype = b1_ref.dtype

    x = x_ref[...]                                                # [TB, D] bf16

    h1 = jnp.dot(x, w1_ref[...], preferred_element_type=ep_dtype)
    h1 = jnp.maximum(h1 + b1_ref[...], 0).astype(jnp.bfloat16)    # [TB, H]

    h2 = jnp.dot(h1, w2_ref[...], preferred_element_type=ep_dtype)
    h2 = jnp.maximum(h2 + b2_ref[...], 0).astype(jnp.bfloat16)    # [TB, H]

    # Final layer (out_features=1) as a lane-dense MXU matmul:
    #   w3[1,H] . h2[TB,H]^T -> [1, TB]   (f32 accumulation)
    y = lax.dot_general(
        w3_ref[...], h2,
        dimension_numbers=(((1,), (1,)), ((), ())),
        preferred_element_type=jnp.float32,
    )                                                             # [1, TB]
    o_ref[...] = (y + b3_ref[...]).reshape(o_ref.shape)           # [1, 1, TB]


def _round_up(x, m):
    return ((x + m - 1) // m) * m


def _choose_tb(B):
    # Small batches: one block covering the sublane-padded batch.
    if B <= 256:
        return _round_up(B, 16)
    # Large batches: big tiles amortize the ~0.35 us/step grid overhead while
    # keeping n_blocks >= 2 (so the "parallel" axis can use both v7x TCs) and
    # keeping the [TB,512] intermediates + double-buffered x tiles well inside
    # the default scoped VMEM limits on v5e/v6e/v7x.
    return 512 if B <= 2048 else 1024


def _bf16_vpu_supported():
    # v6e / v7x VALUs pack bf16; v5e and older do not (keep f32 epilogue there).
    try:
        kind = jax.devices()[0].device_kind.lower()
    except Exception:
        return False
    return any(tag in kind for tag in ("v6", "v7", "7x"))


def prepare_params(params, *, bf16_epilogue):
    """One-time weight prep (cast/reshape) so it is not paid on every call."""
    w1, b1, w2, b2, w3, b3 = params
    ep = jnp.bfloat16 if bf16_epilogue else jnp.float32
    return (
        w1.astype(jnp.bfloat16),            # [D, H]
        b1.astype(ep),                      # [1, H]
        w2.astype(jnp.bfloat16),            # [H, H]
        b2.astype(ep),                      # [1, H]
        w3.reshape(1, -1).astype(jnp.bfloat16),   # [H,1] -> [1,H]
        b3.reshape(1, 1).astype(jnp.float32),     # [1,1]
    )


def mlp_forward(x_flat, w1_b, b1_e, w2_b, b2_e, w3_row, b3_2d):
    """x_flat: [B, D] f32; weights already prepared by prepare_params()."""
    B, D = x_flat.shape
    H = w1_b.shape[1]                 # 512

    TB = _choose_tb(B)
    Bp = _round_up(B, TB)
    n_blocks = Bp // TB

    x_b = x_flat.astype(jnp.bfloat16)
    if Bp != B:
        x_b = jnp.pad(x_b, ((0, Bp - B), (0, 0)))

    out = pl.pallas_call(
        mlp_kernel,
        out_shape=jax.ShapeDtypeStruct((n_blocks, 1, TB), jnp.float32),
        grid=(n_blocks,),
        in_specs=[
            pl.BlockSpec((TB, D), lambda i: (i, 0)),   # x tile (pipelined)
            pl.BlockSpec((D, H),  lambda i: (0, 0)),   # w1 (weight-stationary)
            pl.BlockSpec((1, H),  lambda i: (0, 0)),   # b1
            pl.BlockSpec((H, H),  lambda i: (0, 0)),   # w2
            pl.BlockSpec((1, H),  lambda i: (0, 0)),   # b2
            pl.BlockSpec((1, H),  lambda i: (0, 0)),   # w3 row
            pl.BlockSpec((1, 1),  lambda i: (0, 0)),   # b3
        ],
        out_specs=pl.BlockSpec((1, 1, TB), lambda i: (i, 0, 0)),  # lane-dense slab
        compiler_params=pltpu.CompilerParams(
            dimension_semantics=("parallel",),
        ),
    )(x_b, w1_b, b1_e, w2_b, b2_e, w3_row, b3_2d)

    return out.reshape(Bp, 1)[:B]


def init_params(key, input_size, hidden=512, out=1):
    # Deterministic synthetic init (PyTorch-style uniform bounds), not a checkpoint.
    ks = jax.random.split(key, 6)

    def linear(kw, kb, fan_in, fan_out):
        bound = 1.0 / jnp.sqrt(fan_in)
        # stored as [in, out] (transposed vs torch's [out, in])
        w = jax.random.uniform(kw, (fan_in, fan_out), jnp.float32, -bound, bound)
        b = jax.random.uniform(kb, (1, fan_out), jnp.float32, -bound, bound)
        return w, b

    w1, b1 = linear(ks[0], ks[1], input_size, hidden)
    w2, b2 = linear(ks[2], ks[3], hidden, hidden)
    w3, b3 = linear(ks[4], ks[5], hidden, out)
    return w1, b1, w2, b2, w3, b3


if __name__ == "__main__":
    key = jax.random.PRNGKey(0)
    k_x, k_p = jax.random.split(key)

    # Small example input: batch=2, channels=4, spatial=16 -> flattened dim 64.
    x = jax.random.normal(k_x, (2, 4, 16), jnp.float32)
    B = x.shape[0]
    input_size = x.shape[1] * x.shape[2]          # 64
    x_flat = x.reshape(B, input_size)             # nn.Flatten()

    params = init_params(k_p, input_size)
    # One-time weight preparation (hoisted out of the per-call path).
    kernel_params = prepare_params(params, bf16_epilogue=_bf16_vpu_supported())

    fwd = jax.jit(mlp_forward)
    out = jax.block_until_ready(fwd(x_flat, *kernel_params))

    # Reference in plain f32 JAX; tolerance loosened for bf16 matmul operands.
    w1, b1, w2, b2, w3, b3 = params
    ref = jnp.maximum(x_flat @ w1 + b1, 0.0)
    ref = jnp.maximum(ref @ w2 + b2, 0.0)
    ref = ref @ w3 + b3
    assert out.shape == (B, 1)
    assert jnp.allclose(out, ref, atol=5e-2, rtol=5e-2)

    print("KERNEL_OK")
</pallas_src>

<mosaic_0001>
module attributes {stable_mosaic.version = 11 : i64} {
  func.func @mlp_kernel(%arg0: i32, %arg1: memref<16x64xbf16, #tpu.memory_space<vmem>>, %arg2: memref<64x512xbf16, #tpu.memory_space<vmem>>, %arg3: memref<1x512xf32, #tpu.memory_space<vmem>>, %arg4: memref<512x512xbf16, #tpu.memory_space<vmem>>, %arg5: memref<1x512xf32, #tpu.memory_space<vmem>>, %arg6: memref<1x512xbf16, #tpu.memory_space<vmem>>, %arg7: memref<1x1xf32, #tpu.memory_space<vmem>>, %arg8: memref<1x1x16xf32, #tpu.memory_space<vmem>>) attributes {dimension_semantics = [#tpu.dimension_semantics<parallel>], iteration_bounds = array<i64: 1>, scalar_prefetch = 0 : i64, scratch_operands = 0 : i64, tpu.core_type = #tpu.core_type<tc>, window_params = [{transform_indices = @transform_0, window_bounds = array<i64: 16, 64>}, {pipeline_mode = #tpu.pipeline_mode<synchronous>, transform_indices = @transform_1, window_bounds = array<i64: 64, 512>}, {pipeline_mode = #tpu.pipeline_mode<synchronous>, transform_indices = @transform_2, window_bounds = array<i64: 1, 512>}, {pipeline_mode = #tpu.pipeline_mode<synchronous>, transform_indices = @transform_3, window_bounds = array<i64: 512, 512>}, {pipeline_mode = #tpu.pipeline_mode<synchronous>, transform_indices = @transform_4, window_bounds = array<i64: 1, 512>}, {pipeline_mode = #tpu.pipeline_mode<synchronous>, transform_indices = @transform_5, window_bounds = array<i64: 1, 512>}, {pipeline_mode = #tpu.pipeline_mode<synchronous>, transform_indices = @transform_6, window_bounds = array<i64: 1, 1>}, {transform_indices = @transform_7, window_bounds = array<i64: 1, 1, 16>}]} {
    %c0 = arith.constant 0 : index
    %c0_0 = arith.constant 0 : index
    %0 = vector.load %arg1[%c0, %c0_0] : memref<16x64xbf16, #tpu.memory_space<vmem>>, vector<16x64xbf16>
    %c0_1 = arith.constant 0 : index
    %c0_2 = arith.constant 0 : index
    %1 = vector.load %arg2[%c0_1, %c0_2] : memref<64x512xbf16, #tpu.memory_space<vmem>>, vector<64x512xbf16>
    %cst = arith.constant dense<0.000000e+00> : vector<16x512xf32>
    %2 = tpu.matmul %0, %1, %cst {dimension_numbers = #tpu.dot_dimension_numbers<[1], [0], [0], [1], [0, 0, 1, 1], [], []>} : vector<16x64xbf16>, vector<64x512xbf16>, vector<16x512xf32> -> vector<16x512xf32>
    %c0_3 = arith.constant 0 : index
    %c0_4 = arith.constant 0 : index
    %3 = vector.load %arg3[%c0_3, %c0_4] : memref<1x512xf32, #tpu.memory_space<vmem>>, vector<1x512xf32>
    %4 = vector.broadcast %3 : vector<1x512xf32> to vector<16x512xf32>
    %5 = arith.addf %2, %4 : vector<16x512xf32>
    %cst_5 = arith.constant 0.000000e+00 : f32
    %6 = vector.broadcast %cst_5 : f32 to vector<16x512xf32>
    %7 = arith.maximumf %5, %6 : vector<16x512xf32>
    %8 = arith.truncf %7 : vector<16x512xf32> to vector<16x512xbf16>
    %c0_6 = arith.constant 0 : index
    %c0_7 = arith.constant 0 : index
    %9 = vector.load %arg4[%c0_6, %c0_7] : memref<512x512xbf16, #tpu.memory_space<vmem>>, vector<512x512xbf16>
    %cst_8 = arith.constant dense<0.000000e+00> : vector<16x512xf32>
    %10 = tpu.matmul %8, %9, %cst_8 {dimension_numbers = #tpu.dot_dimension_numbers<[1], [0], [0], [1], [0, 0, 1, 1], [], []>} : vector<16x512xbf16>, vector<512x512xbf16>, vector<16x512xf32> -> vector<16x512xf32>
    %c0_9 = arith.constant 0 : index
    %c0_10 = arith.constant 0 : index
    %11 = vector.load %arg5[%c0_9, %c0_10] : memref<1x512xf32, #tpu.memory_space<vmem>>, vector<1x512xf32>
    %12 = vector.broadcast %11 : vector<1x512xf32> to vector<16x512xf32>
    %13 = arith.addf %10, %12 : vector<16x512xf32>
    %cst_11 = arith.constant 0.000000e+00 : f32
    %14 = vector.broadcast %cst_11 : f32 to vector<16x512xf32>
    %15 = arith.maximumf %13, %14 : vector<16x512xf32>
    %16 = arith.truncf %15 : vector<16x512xf32> to vector<16x512xbf16>
    %c0_12 = arith.constant 0 : index
    %c0_13 = arith.constant 0 : index
    %17 = vector.load %arg6[%c0_12, %c0_13] : memref<1x512xbf16, #tpu.memory_space<vmem>>, vector<1x512xbf16>
    %cst_14 = arith.constant dense<0.000000e+00> : vector<1x16xf32>
    %18 = tpu.matmul %17, %16, %cst_14 {dimension_numbers = #tpu.dot_dimension_numbers<[1], [1], [0], [0], [0, 0, 1, 0], [], []>} : vector<1x512xbf16>, vector<16x512xbf16>, vector<1x16xf32> -> vector<1x16xf32>
    %c0_15 = arith.constant 0 : index
    %c0_16 = arith.constant 0 : index
    %19 = vector.load %arg7[%c0_15, %c0_16] : memref<1x1xf32, #tpu.memory_space<vmem>>, vector<1x1xf32>
    %20 = vector.broadcast %19 : vector<1x1xf32> to vector<1x16xf32>
    %21 = arith.addf %18, %20 : vector<1x16xf32>
    %22 = vector.shape_cast %21 : vector<1x16xf32> to vector<1x1x16xf32>
    %c0_17 = arith.constant 0 : index
    %c0_18 = arith.constant 0 : index
    %c0_19 = arith.constant 0 : index
    %23 = vector.load %arg8[%c0_17, %c0_18, %c0_19] : memref<1x1x16xf32, #tpu.memory_space<vmem>>, vector<1x1x16xf32>
    tpu.vector_store %arg8[%c0_17, %c0_18, %c0_19], %22 {strides = array<i32>} : memref<1x1x16xf32, #tpu.memory_space<vmem>>, vector<1x1x16xf32>,
    return
  }
  func.func @transform_0(%arg0: i32) -> (i32, i32) {
    %c0_i32 = arith.constant 0 : i32
    %c0_i32_0 = arith.constant 0 : i32
    return %arg0, %c0_i32 : i32, i32
  }
  func.func @transform_1(%arg0: i32) -> (i32, i32) {
    %c0_i32 = arith.constant 0 : i32
    %c0_i32_0 = arith.constant 0 : i32
    %c0_i32_1 = arith.constant 0 : i32
    return %c0_i32, %c0_i32_0 : i32, i32
  }
  func.func @transform_2(%arg0: i32) -> (i32, i32) {
    %c0_i32 = arith.constant 0 : i32
    %c0_i32_0 = arith.constant 0 : i32
    %c0_i32_1 = arith.constant 0 : i32
    return %c0_i32, %c0_i32_0 : i32, i32
  }
  func.func @transform_3(%arg0: i32) -> (i32, i32) {
    %c0_i32 = arith.constant 0 : i32
    %c0_i32_0 = arith.constant 0 : i32
    %c0_i32_1 = arith.constant 0 : i32
    return %c0_i32, %c0_i32_0 : i32, i32
  }
  func.func @transform_4(%arg0: i32) -> (i32, i32) {
    %c0_i32 = arith.constant 0 : i32
    %c0_i32_0 = arith.constant 0 : i32
    %c0_i32_1 = arith.constant 0 : i32
    return %c0_i32, %c0_i32_0 : i32, i32
  }
  func.func @transform_5(%arg0: i32) -> (i32, i32) {
    %c0_i32 = arith.constant 0 : i32
    %c0_i32_0 = arith.constant 0 : i32
    %c0_i32_1 = arith.constant 0 : i32
    return %c0_i32, %c0_i32_0 : i32, i32
  }
  func.func @transform_6(%arg0: i32) -> (i32, i32) {
    %c0_i32 = arith.constant 0 : i32
    %c0_i32_0 = arith.constant 0 : i32
    %c0_i32_1 = arith.constant 0 : i32
    return %c0_i32, %c0_i32_0 : i32, i32
  }
  func.func @transform_7(%arg0: i32) -> (i32, i32, i32) {
    %c0_i32 = arith.constant 0 : i32
    %c0_i32_0 = arith.constant 0 : i32
    %c0_i32_1 = arith.constant 0 : i32
    return %arg0, %c0_i32, %c0_i32_0 : i32, i32, i32
  }
}

</mosaic_0001>

<bundles_post_ra>
// kernel: mlp_forward.1
= control target key start
LH: loop header
LB: loop body
LE: loop exit
PB: predicated region body
PF: predicated region fallthrough
CT: control target
= control target key end

     0   :  { %s1942_s0 = inlined_call_operand.vmem [shape: bf16[16,64], index: 0, kind: input, shape index: {}]   ;;  %s1943_s1 = inlined_call_operand.hbm [shape: bf16[64,512], index: 1, kind: input, shape index: {}]   ;;  %s1944_s2 = inlined_call_operand.vmem [shape: f32[1,512], index: 2, kind: input, shape index: {}]   ;;  %s1945_s3 = inlined_call_operand.hbm [shape: bf16[512,512], index: 3, kind: input, shape index: {}]   ;;  %s1946_s4 = inlined_call_operand.vmem [shape: f32[1,512], index: 4, kind: input, shape index: {}]   ;;  %s1947_s5 = inlined_call_operand.vmem [shape: bf16[1,512], index: 5, kind: input, shape index: {}]   ;;  %s1948_s6 = inlined_call_operand.<no memory space> [shape: f32[1,1], index: 6, kind: input, shape index: {}]   ;;  %s1949_s7 = inlined_call_operand.vmem [shape: f32[1,1,16], index: 7, kind: output, shape index: {}]  }
   0x1   :  { %v12_v0 = vstv %s1948_s6 }
   0x2   :  { %13 = vst [vmem:[#allocation2] sm:$0x1] %v12_v0 }
   0x3   :  { %14 = vsyncpa [#allocation4], 0 }
   0x4   :  { %15 = vsyncpa [#allocation6], 0  ;;  %s1824_s26 = smov [#allocation3]   ;;  %s1776_s30 = scalar_lea.hbm %s1943_s1, 2048 }
   0x5   :  { %s23_s27 = sshll.u32 %s1824_s26, 4  ;;  %p1777_p0 = scmp.ne.s32.totalorder %s1943_s1, %s1776_s30  ;;  %s24_s27 = int_to_ptr.vmem [resolvable:$true] %s23_s27 }
   0x6   :  { %p1780_p1 = scmp.lt.u32.totalorder %s1776_s30, %s1943_s1 }
   0x8   :  { %p1782_p2 = pnand %p1780_p1, %p1777_p0 }
   0xa   :  { %1785 = shalt.err (!%p1782_p2)
}
   0xb   :  { %s1786_s6 = scalar_lea.vmem %s24_s27, 2048  ;;  %p1791_p4 = scmp.lt.s32.totalorder %s24_s27, %s24_s27 }
   0xc   :  { %p1787_p3 = scmp.ne.s32.totalorder %s24_s27, %s1786_s6  ;;  %p1792_p5 = scmp.lt.s32.totalorder %s1786_s6, %s1786_s6 }
   0xe   :  { %p1793_p6 = por %p1792_p5, %p1791_p4 }
  0x10   :  { %p1794_p7 = pnand %p1793_p6, %p1787_p3 }
  0x12   :  { %1797 = shalt.err (!%p1794_p7)
}
  0x13   :  { %s1825_s12 = smov 256   ;;  %s1826_s13 = smov 16  }
  0x14   :  { %29 = dma.hbm_to_vmem [thread:$0]  %s1943_s1, 2048, %s24_s27, [#allocation4], %s1825_s12, %s1825_s12, %s1826_s13  }
  0x15   :  { %s1827_s16 = smov [#allocation5]   ;;  %s1798_s20 = scalar_lea.hbm %s1945_s3, 16384 }
  0x16   :  { %s37_s17 = sshll.u32 %s1827_s16, 4  ;;  %p1799_p8 = scmp.ne.s32.totalorder %s1945_s3, %s1798_s20  ;;  %s38_s17 = int_to_ptr.vmem [resolvable:$true] %s37_s17 }
  0x17   :  { %p1802_p9 = scmp.lt.u32.totalorder %s1798_s20, %s1945_s3 }
  0x19   :  { %p1804_p10 = pnand %p1802_p9, %p1799_p8 }
  0x1b   :  { %1807 = shalt.err (!%p1804_p10)
}
  0x1c   :  { %s1808_s25 = scalar_lea.vmem %s38_s17, 16384  ;;  %p1813_p12 = scmp.lt.s32.totalorder %s38_s17, %s38_s17 }
  0x1d   :  { %p1809_p11 = scmp.ne.s32.totalorder %s38_s17, %s1808_s25  ;;  %p1814_p13 = scmp.lt.s32.totalorder %s1808_s25, %s1808_s25 }
  0x1f   :  { %p1815_p0 = por %p1814_p13, %p1813_p12 }
  0x21   :  { %p1816_p1 = pnand %p1815_p0, %p1809_p11 }
  0x23   :  { %1819 = shalt.err (!%p1816_p1)
}
  0x24   :  { %43 = dma.hbm_to_vmem [thread:$0]  %s1945_s3, 16384, %s38_s17, [#allocation6], %s1825_s12, %s1825_s12, %s1826_s13  }
  0x25   :  { %1820 = dma.done.wait [#allocation4], 2048  }
  0x26   :  { %1821 = vsyncadd [#allocation4], 4294965248 }
  0x27   :  { %1822 = dma.done.wait [#allocation6], 16384  }
  0x28   :  { %1823 = vsyncadd [#allocation6], 4294950912  ;;  %v1828_v1 = vmov 0   ;;  %v1559_v2 = vld [vmem:[#allocation3 + $0x4] ss:$16 sps:$4 sm:$0xff]   ;;  %vm182_vm0 = vcmask 523264  }
  0x29   :  { %218 = vmatprep.mubr.bf16.mxu0 %v1828_v1  ;;  %261 = vmatprep.mubr.bf16.mxu1 %v1828_v1  ;;  %v1561_v3 = vld [vmem:[#allocation3] ss:$16 sps:$4 sm:$0xff]   ;;  %v1562_v4 = vld [vmem:[#allocation3 + $0x24] ss:$16 sps:$4 sm:$0xff]   ;;  %v1572_v8 = vld [vmem:[#allocation3 + $0xc] ss:$16 sps:$4 sm:$0xff]  }
  0x2a   :  { %1558 = vset.pattern.permute.xlu0 %v1828_v1  ;;  %186 = vmatprep.subr.bf16.mxu0 %v1559_v2  ;;  %v1564_v5 = vld [vmem:[#allocation3 + $0x20] ss:$16 sps:$4 sm:$0xff]   ;;  %v1565_v6 = vld [vmem:[#allocation3 + $0x44] ss:$16 sps:$4 sm:$0xff]   ;;  %v1574_v9 = vld [vmem:[#allocation3 + $0x8] ss:$16 sps:$4 sm:$0xff]  }
  0x2b   :  { %187 = vmatpush1.bf16.msra.mxu0 %v1561_v3  ;;  %v1567_v7 = vld [vmem:[#allocation3 + $0x40] ss:$16 sps:$4 sm:$0xff]   ;;  %v1568_v10 = vld [vmem:[#allocation3 + $0x64] ss:$16 sps:$4 sm:$0xff]   ;;  %v1575_v11 = vld [vmem:[#allocation3 + $0x2c] ss:$16 sps:$4 sm:$0xff]   ;;  %229 = vmatprep.subr.bf16.mxu1 %v1572_v8 }
  0x2c   :  { %188 = vmatprep.subr.bf16.mxu0 %v1562_v4  ;;  %230 = vmatpush1.bf16.msra.mxu1 %v1574_v9  ;;  %v1577_v12 = vld [vmem:[#allocation3 + $0x28] ss:$16 sps:$4 sm:$0xff]   ;;  %v1570_v13 = vld [vmem:[#allocation3 + $0x60] ss:$16 sps:$4 sm:$0xff]   ;;  %v1578_v14 = vld [vmem:[#allocation3 + $0x4c] ss:$16 sps:$4 sm:$0xff]  }
  0x2d   :  { %231 = vmatprep.subr.bf16.mxu1 %v1575_v11  ;;  %v1586_v15 = vld [vmem:[#allocation5 + $0x4] ss:$16 sps:$4 sm:$0xff]   ;;  %v1580_v17 = vld [vmem:[#allocation3 + $0x48] ss:$16 sps:$4 sm:$0xff]   ;;  %v1581_v18 = vld [vmem:[#allocation3 + $0x6c] ss:$16 sps:$4 sm:$0xff]  }
  0x2e   :  { %v1571_v16 = vld [vmem:[%s1942_s0] sm:$0xff]   ;;  %v1583_v21 = vld [vmem:[#allocation3 + $0x68] ss:$16 sps:$4 sm:$0xff]   ;;  %vm1378_vm1 = vcmask 122880  }
  0x2f   :  { %189 = vmatpush1.bf16.msra.mxu0 %v1564_v5  ;;  %v1584_v19 = vld [vmem:[#allocation5] ss:$16 sps:$4 sm:$0xff]   ;;  %v1592_v20 = vld [vmem:[#allocation5 + $0x24] ss:$16 sps:$4 sm:$0xff]   ;;  %v1589_v22 = vld [vmem:[#allocation5 + $0xc] ss:$16 sps:$4 sm:$0xff]  }
  0x30   :  { %190 = vmatprep.subr.bf16.mxu0 %v1565_v6  ;;  %232 = vmatpush1.bf16.msra.mxu1 %v1577_v12  ;;  %v1590_v23 = vld [vmem:[#allocation5 + $0x20] ss:$16 sps:$4 sm:$0xff]   ;;  %v1598_v24 = vld [vmem:[#allocation5 + $0x44] ss:$16 sps:$4 sm:$0xff]   ;;  %v1587_v25 = vld [vmem:[#allocation5 + $0x8] ss:$16 sps:$4 sm:$0xff]  }
  0x31   :  { %233 = vmatprep.subr.bf16.mxu1 %v1578_v14  ;;  %v1595_v26 = vld [vmem:[#allocation5 + $0x2c] ss:$16 sps:$4 sm:$0xff]   ;;  %v1596_v27 = vld [vmem:[#allocation5 + $0x40] ss:$16 sps:$4 sm:$0xff]   ;;  %v1604_v28 = vld [vmem:[#allocation5 + $0x64] ss:$16 sps:$4 sm:$0xff]  }
  0x32   :  { %v1593_v29 = vld [vmem:[#allocation5 + $0x28] ss:$16 sps:$4 sm:$0xff]   ;;  %v1601_v30 = vld [vmem:[#allocation5 + $0x4c] ss:$16 sps:$4 sm:$0xff]   ;;  %v1602_v31 = vld [vmem:[#allocation5 + $0x60] ss:$16 sps:$4 sm:$0xff]  }
  0x33   :  { %191 = vmatpush1.bf16.msra.mxu0 %v1567_v7  ;;  %v1610_v32 = vld [vmem:[#allocation5 + $0x84] ss:$16 sps:$4 sm:$0xff]   ;;  %v1599_v33 = vld [vmem:[#allocation5 + $0x48] ss:$16 sps:$4 sm:$0xff]   ;;  %v1607_v34 = vld [vmem:[#allocation5 + $0x6c] ss:$16 sps:$4 sm:$0xff]  }
  0x34   :  { %192 = vmatprep.subr.bf16.mxu0 %v1568_v10  ;;  %234 = vmatpush1.bf16.msra.mxu1 %v1580_v17  ;;  %v1608_v35 = vld [vmem:[#allocation5 + $0x80] ss:$16 sps:$4 sm:$0xff]   ;;  %v1616_v36 = vld [vmem:[#allocation5 + $0xa4] ss:$16 sps:$4 sm:$0xff]   ;;  %v1605_v37 = vld [vmem:[#allocation5 + $0x68] ss:$16 sps:$4 sm:$0xff]  }
  0x35   :  { %235 = vmatprep.subr.bf16.mxu1 %v1581_v18  ;;  %v1613_v38 = vld [vmem:[#allocation5 + $0x8c] ss:$16 sps:$4 sm:$0xff]   ;;  %v1614_v39 = vld [vmem:[#allocation5 + $0xa0] ss:$16 sps:$4 sm:$0xff]   ;;  %v1622_v40 = vld [vmem:[#allocation5 + $0xc4] ss:$16 sps:$4 sm:$0xff]  }
  0x36   :  { %v1611_v41 = vld [vmem:[#allocation5 + $0x88] ss:$16 sps:$4 sm:$0xff]   ;;  %v1619_v42 = vld [vmem:[#allocation5 + $0xac] ss:$16 sps:$4 sm:$0xff]   ;;  %v1620_v43 = vld [vmem:[#allocation5 + $0xc0] ss:$16 sps:$4 sm:$0xff]  }
  0x37   :  { %193 = vmatpush1.bf16.msra.mxu0 %v1570_v13  ;;  %v1628_v44 = vld [vmem:[#allocation5 + $0xe4] ss:$16 sps:$4 sm:$0xff]   ;;  %v1617_v45 = vld [vmem:[#allocation5 + $0xa8] ss:$16 sps:$4 sm:$0xff]   ;;  %v1625_v46 = vld [vmem:[#allocation5 + $0xcc] ss:$16 sps:$4 sm:$0xff]  }
  0x38   :  { %1074 = vmatprep.subr.bf16.mxu0 %v1586_v15  ;;  %236 = vmatpush1.bf16.msra.mxu1 %v1583_v21  ;;  %v1626_v47 = vld [vmem:[#allocation5 + $0xe0] ss:$16 sps:$4 sm:$0xff]   ;;  %v1634_v48 = vld [vmem:[#allocation5 + $0x104] ss:$16 sps:$4 sm:$0xff]   ;;  %v1623_v49 = vld [vmem:[#allocation5 + $0xc8] ss:$16 sps:$4 sm:$0xff]   ;;  %v77_v21 = vlaneseq }
  0x39   :  { %1160 = vmatprep.subr.bf16.mxu1 %v1589_v22  ;;  %v1631_v50 = vld [vmem:[#allocation5 + $0xec] ss:$16 sps:$4 sm:$0xff]   ;;  %v1632_v51 = vld [vmem:[#allocation5 + $0x100] ss:$16 sps:$4 sm:$0xff]   ;;  %v1629_v52 = vld [vmem:[#allocation5 + $0xe8] ss:$16 sps:$4 sm:$0xff]  }
  0x3a   :  { %1403 = vmatmul.mubr.msk.bf16.vlgmr.msra.gmra.mrb[0].mxu0 %vm182_vm0, %v1571_v16  ;;  %v1640_v53 = vld [vmem:[#allocation5 + $0x124] ss:$16 sps:$4 sm:$0xff]   ;;  %v1637_v54 = vld [vmem:[#allocation5 + $0x10c] ss:$16 sps:$4 sm:$0xff]   ;;  %v1638_v55 = vld [vmem:[#allocation5 + $0x120] ss:$16 sps:$4 sm:$0xff]  }
  0x3b   :  { %1075 = vmatpush1.bf16.msra.mxu0 %v1584_v19  ;;  %1404 = vmatmul.mubr.msk.bf16.vlgmr.msra.gmra.mrb[0].mxu1 %vm182_vm0, %v1571_v16  ;;  %v1646_v56 = vld [vmem:[#allocation5 + $0x144] ss:$16 sps:$4 sm:$0xff]   ;;  %v1635_v57 = vld [vmem:[#allocation5 + $0x108] ss:$16 sps:$4 sm:$0xff]   ;;  %v1643_v58 = vld [vmem:[#allocation5 + $0x12c] ss:$16 sps:$4 sm:$0xff]  }
  0x3c   :  { %1076 = vmatprep.subr.bf16.mxu0 %v1592_v20  ;;  %1161 = vmatpush1.bf16.msra.mxu1 %v1587_v25  ;;  %v1644_v59 = vld [vmem:[#allocation5 + $0x140] ss:$16 sps:$4 sm:$0xff]   ;;  %v1652_v60 = vld [vmem:[#allocation5 + $0x164] ss:$16 sps:$4 sm:$0xff]   ;;  %v1641_v61 = vld [vmem:[#allocation5 + $0x128] ss:$16 sps:$4 sm:$0xff]  }
  0x3d   :  { %1162 = vmatprep.subr.bf16.mxu1 %v1595_v26  ;;  %v1649_v62 = vld [vmem:[#allocation5 + $0x14c] ss:$16 sps:$4 sm:$0xff]   ;;  %v1650_v63 = vld [vmem:[#allocation5 + $0x160] ss:$16 sps:$4 sm:$0xff]   ;;  %v1658_v0 = vld [vmem:[#allocation5 + $0x184] ss:$16 sps:$4 sm:$0xff]  }
  0x3e   :  { %v1647_v1 = vld [vmem:[#allocation5 + $0x148] ss:$16 sps:$4 sm:$0xff]   ;;  %v1655_v2 = vld [vmem:[#allocation5 + $0x16c] ss:$16 sps:$4 sm:$0xff]   ;;  %v1656_v3 = vld [vmem:[#allocation5 + $0x180] ss:$16 sps:$4 sm:$0xff]  }
  0x3f   :  { %1077 = vmatpush1.bf16.msra.mxu0 %v1590_v23  ;;  %v1664_v4 = vld [vmem:[#allocation5 + $0x1a4] ss:$16 sps:$4 sm:$0xff]   ;;  %v1653_v5 = vld [vmem:[#allocation5 + $0x168] ss:$16 sps:$4 sm:$0xff]   ;;  %v1661_v6 = vld [vmem:[#allocation5 + $0x18c] ss:$16 sps:$4 sm:$0xff]  }
  0x40   :  { %1078 = vmatprep.subr.bf16.mxu0 %v1598_v24  ;;  %1163 = vmatpush1.bf16.msra.mxu1 %v1593_v29  ;;  %v1662_v7 = vld [vmem:[#allocation5 + $0x1a0] ss:$16 sps:$4 sm:$0xff]   ;;  %v1659_v8 = vld [vmem:[#allocation5 + $0x188] ss:$16 sps:$4 sm:$0xff]   ;;  %v1667_v9 = vld [vmem:[#allocation5 + $0x1ac] ss:$16 sps:$4 sm:$0xff]  }
  0x41   :  { %1164 = vmatprep.subr.bf16.mxu1 %v1601_v30  ;;  %v1665_v10 = vld [vmem:[#allocation5 + $0x1a8] ss:$16 sps:$4 sm:$0xff]   ;;  %v1670_v11 = vld [vmem:[#allocation5 + $0x1c4] ss:$16 sps:$4 sm:$0xff]   ;;  %v1673_v12 = vld [vmem:[#allocation5 + $0x1cc] ss:$16 sps:$4 sm:$0xff]  }
  0x42   :  { %v1668_v13 = vld [vmem:[#allocation5 + $0x1c0] ss:$16 sps:$4 sm:$0xff]   ;;  %v1671_v14 = vld [vmem:[#allocation5 + $0x1c8] ss:$16 sps:$4 sm:$0xff]   ;;  %v1676_v15 = vld [vmem:[#allocation5 + $0x1e4] ss:$16 sps:$4 sm:$0xff]  }
  0x43   :  { %1079 = vmatpush1.bf16.msra.mxu0 %v1596_v27  ;;  %v1679_v16 = vld [vmem:[#allocation5 + $0x1ec] ss:$16 sps:$4 sm:$0xff]   ;;  %v1674_v17 = vld [vmem:[#allocation5 + $0x1e0] ss:$16 sps:$4 sm:$0xff]   ;;  %v1677_v18 = vld [vmem:[#allocation5 + $0x1e8] ss:$16 sps:$4 sm:$0xff]  }
  0x44   :  { %1080 = vmatprep.subr.bf16.mxu0 %v1604_v28  ;;  %1165 = vmatpush1.bf16.msra.mxu1 %v1599_v33  ;;  %v1682_v19 = vld [vmem:[#allocation5 + $0x204] ss:$16 sps:$4 sm:$0xff]   ;;  %v1685_v20 = vld [vmem:[#allocation5 + $0x20c] ss:$16 sps:$4 sm:$0xff]   ;;  %v1902_v22 = vshrl.u32 %v77_v21, 7 }
  0x45   :  { %1166 = vmatprep.subr.bf16.mxu1 %v1607_v34  ;;  %v75_v24 = vld [vmem:[%s1944_s2] sm:$0xf]  ;;  %v1719_v21 = vld [vmem:[#allocation5 + $0x2c8] ss:$16 sps:$4 sm:$0xff]  }
  0x46   :  { %v1905_v23 = vsub.s32 0, %v1902_v22  ;;  %v83_v25 = vsub.s32 1, %v1902_v22  ;;  %v87_v29 = vsub.s32 2, %v1902_v22 }
  0x47   :  { %1081 = vmatpush1.bf16.msra.mxu0 %v1602_v31 }
  0x48   :  { %1082 = vmatprep.subr.bf16.mxu0 %v1610_v32  ;;  %1167 = vmatpush1.bf16.msra.mxu1 %v1605_v37  ;;  %v80_v26 = vrot.slane %v75_v24, %v1905_v23  ;;  %v84_v27 = vrot.slane %v75_v24, %v83_v25  ;;  %v91_v32 = vsub.s32 3, %v1902_v22 }
  0x49   :  { %1168 = vmatprep.subr.bf16.mxu1 %v1613_v38  ;;  %v88_v38 = vrot.slane %v75_v24, %v87_v29 }
  0x4b   :  { %1083 = vmatpush1.bf16.msra.mxu0 %v1608_v35 }
  0x4c   :  { %1084 = vmatprep.subr.bf16.mxu0 %v1616_v36  ;;  %1169 = vmatpush1.bf16.msra.mxu1 %v1611_v41  ;;  %v92_v41 = vrot.slane %v75_v24, %v91_v32  ;;  %v1724_v24 = vld [vmem:[#allocation5 + $0x2e4] ss:$16 sps:$4 sm:$0xff]  }
  0x4d   :  { %1170 = vmatprep.subr.bf16.mxu1 %v1619_v42 }
  0x4f   :  { %1085 = vmatpush1.bf16.msra.mxu0 %v1614_v39 }
  0x50   :  { %1086 = vmatprep.subr.bf16.mxu0 %v1622_v40  ;;  %1171 = vmatpush1.bf16.msra.mxu1 %v1617_v45 }
  0x51   :  { %1172 = vmatprep.subr.bf16.mxu1 %v1625_v46 }
  0x53   :  { %1087 = vmatpush1.bf16.msra.mxu0 %v1620_v43 }
  0x54   :  { %1088 = vmatprep.subr.bf16.mxu0 %v1628_v44  ;;  %1173 = vmatpush1.bf16.msra.mxu1 %v1623_v49 }
  0x55   :  { %1174 = vmatprep.subr.bf16.mxu1 %v1631_v50 }
  0x57   :  { %1089 = vmatpush1.bf16.msra.mxu0 %v1626_v47  ;;  %v1680_v47 = vld [vmem:[#allocation5 + $0x200] ss:$16 sps:$4 sm:$0xff]  }
  0x58   :  { %1090 = vmatprep.subr.bf16.mxu0 %v1634_v48  ;;  %1175 = vmatpush1.bf16.msra.mxu1 %v1629_v52  ;;  %v1683_v48 = vld [vmem:[#allocation5 + $0x208] ss:$16 sps:$4 sm:$0xff]   ;;  %v1691_v52 = vld [vmem:[#allocation5 + $0x22c] ss:$16 sps:$4 sm:$0xff]  }
  0x59   :  { %1176 = vmatprep.subr.bf16.mxu1 %v1637_v54 }
  0x5b   :  { %1091 = vmatpush1.bf16.msra.mxu0 %v1632_v51  ;;  %v1688_v51 = vld [vmem:[#allocation5 + $0x224] ss:$16 sps:$4 sm:$0xff]  }
  0x5c   :  { %1092 = vmatprep.subr.bf16.mxu0 %v1640_v53  ;;  %1177 = vmatpush1.bf16.msra.mxu1 %v1635_v57 }
  0x5d   :  { %1178 = vmatprep.subr.bf16.mxu1 %v1643_v58 }
  0x5f   :  { %1093 = vmatpush1.bf16.msra.mxu0 %v1638_v55 }
  0x60   :  { %1094 = vmatprep.subr.bf16.mxu0 %v1646_v56  ;;  %1179 = vmatpush1.bf16.msra.mxu1 %v1641_v61  ;;  %v1689_v61 = vld [vmem:[#allocation5 + $0x228] ss:$16 sps:$4 sm:$0xff]  }
  0x61   :  { %1180 = vmatprep.subr.bf16.mxu1 %v1649_v62 }
  0x63   :  { %1095 = vmatpush1.bf16.msra.mxu0 %v1644_v59 }
  0x64   :  { %1096 = vmatprep.subr.bf16.mxu0 %v1652_v60  ;;  %1181 = vmatpush1.bf16.msra.mxu1 %v1647_v1  ;;  %v1686_v60 = vld [vmem:[#allocation5 + $0x220] ss:$16 sps:$4 sm:$0xff]  }
  0x65   :  { %1182 = vmatprep.subr.bf16.mxu1 %v1655_v2 }
  0x67   :  { %1097 = vmatpush1.bf16.msra.mxu0 %v1650_v63  ;;  %v1694_v63 = vld [vmem:[#allocation5 + $0x244] ss:$16 sps:$4 sm:$0xff]  }
  0x68   :  { %1098 = vmatprep.subr.bf16.mxu0 %v1658_v0  ;;  %1183 = vmatpush1.bf16.msra.mxu1 %v1653_v5  ;;  %v1697_v0 = vld [vmem:[#allocation5 + $0x24c] ss:$16 sps:$4 sm:$0xff]   ;;  %v1695_v5 = vld [vmem:[#allocation5 + $0x248] ss:$16 sps:$4 sm:$0xff]  }
  0x69   :  { %1184 = vmatprep.subr.bf16.mxu1 %v1661_v6  ;;  %v1700_v6 = vld [vmem:[#allocation5 + $0x264] ss:$16 sps:$4 sm:$0xff]  }
  0x6b   :  { %1099 = vmatpush1.bf16.msra.mxu0 %v1656_v3 }
  0x6c   :  { %1100 = vmatprep.subr.bf16.mxu0 %v1664_v4  ;;  %1185 = vmatpush1.bf16.msra.mxu1 %v1659_v8  ;;  %v1692_v4 = vld [vmem:[#allocation5 + $0x240] ss:$16 sps:$4 sm:$0xff]  }
  0x6d   :  { %1186 = vmatprep.subr.bf16.mxu1 %v1667_v9  ;;  %v1698_v8 = vld [vmem:[#allocation5 + $0x260] ss:$16 sps:$4 sm:$0xff]   ;;  %v1701_v9 = vld [vmem:[#allocation5 + $0x268] ss:$16 sps:$4 sm:$0xff]  }
  0x6f   :  { %1101 = vmatpush1.bf16.msra.mxu0 %v1662_v7  ;;  %v1703_v7 = vld [vmem:[#allocation5 + $0x26c] ss:$16 sps:$4 sm:$0xff]  }
  0x70   :  { %1187 = vmatpush1.bf16.msra.mxu1 %v1665_v10  ;;  %1102 = vmatprep.subr.bf16.mxu0 %v1670_v11  ;;  %v1706_v10 = vld [vmem:[#allocation5 + $0x284] ss:$16 sps:$4 sm:$0xff]   ;;  %v1709_v11 = vld [vmem:[#allocation5 + $0x28c] ss:$16 sps:$4 sm:$0xff]  }
  0x71   :  { %1188 = vmatprep.subr.bf16.mxu1 %v1673_v12  ;;  %v1704_v12 = vld [vmem:[#allocation5 + $0x280] ss:$16 sps:$4 sm:$0xff]  }
  0x73   :  { %1103 = vmatpush1.bf16.msra.mxu0 %v1668_v13  ;;  %v1707_v13 = vld [vmem:[#allocation5 + $0x288] ss:$16 sps:$4 sm:$0xff]  }
  0x74   :  { %1189 = vmatpush1.bf16.msra.mxu1 %v1671_v14  ;;  %1104 = vmatprep.subr.bf16.mxu0 %v1676_v15  ;;  %v1712_v14 = vld [vmem:[#allocation5 + $0x2a4] ss:$16 sps:$4 sm:$0xff]   ;;  %v1715_v15 = vld [vmem:[#allocation5 + $0x2ac] ss:$16 sps:$4 sm:$0xff]  }
  0x75   :  { %1190 = vmatprep.subr.bf16.mxu1 %v1679_v16  ;;  %v1710_v16 = vld [vmem:[#allocation5 + $0x2a0] ss:$16 sps:$4 sm:$0xff]  }
  0x77   :  { %1105 = vmatpush1.bf16.msra.mxu0 %v1674_v17  ;;  %v1713_v17 = vld [vmem:[#allocation5 + $0x2a8] ss:$16 sps:$4 sm:$0xff]  }
  0x78   :  { %1191 = vmatpush1.bf16.msra.mxu1 %v1677_v18  ;;  %1117 = vmatprep.subr.bf16.mxu0 %v1682_v19  ;;  %v1718_v18 = vld [vmem:[#allocation5 + $0x2c4] ss:$16 sps:$4 sm:$0xff]   ;;  %v1721_v19 = vld [vmem:[#allocation5 + $0x2cc] ss:$16 sps:$4 sm:$0xff]  }
  0x79   :  { %1203 = vmatprep.subr.bf16.mxu1 %v1685_v20  ;;  %v1716_v20 = vld [vmem:[#allocation5 + $0x2c0] ss:$16 sps:$4 sm:$0xff]  }
 0x10d   :  { %v220_v28 = vpop.f32.mrb[0].mxu0 }
 0x10e   :  { %v221_v30 = vadd.f32 %v220_v28, %v80_v26  ;;  %v222_v31 = vpop.f32.mrb[1].mxu0  ;;  %v263_v45 = vpop.f32.mrb[0].mxu1  ;;  %v1725_v28 = vld [vmem:[#allocation5 + $0x2e8] ss:$16 sps:$4 sm:$0xff]  }
 0x10f   :  { %v223_v33 = vadd.f32 %v222_v31, %v84_v27  ;;  %v224_v34 = vpop.f32.mrb[2].mxu0  ;;  %v264_v49 = vadd.f32 %v263_v45, %v88_v38  ;;  %v265_v50 = vpop.f32.mrb[1].mxu1  ;;  %v1733_v31 = vld [vmem:[#allocation5 + $0x30c] ss:$16 sps:$4 sm:$0xff]   ;;  %v1746_v45 = vld [vmem:[#allocation5 + $0x360] ss:$16 sps:$4 sm:$0xff]  }
 0x110   :  { %v225_v35 = vadd.f32 %v224_v34, %v80_v26  ;;  %v226_v36 = vpop.f32.mrb[3].mxu0  ;;  %v272_v39 = vmax.f32 %v221_v30, 0.0  ;;  %v266_v53 = vadd.f32 %v265_v50, %v92_v41  ;;  %v267_v54 = vpop.f32.mrb[2].mxu1  ;;  %v1727_v26 = vld [vmem:[#allocation5 + $0x2ec] ss:$16 sps:$4 sm:$0xff]  }
 0x111   :  { %v227_v37 = vadd.f32 %v226_v36, %v84_v27  ;;  %v273_v42 = vmax.f32 %v223_v33, 0.0  ;;  %v274_v55 = vmax.f32 %v264_v49, 0.0  ;;  %v268_v56 = vadd.f32 %v267_v54, %v88_v38  ;;  %v269_v57 = vpop.f32.mrb[3].mxu1  ;;  %v1722_v27 = vld [vmem:[#allocation5 + $0x2e0] ss:$16 sps:$4 sm:$0xff]  }
 0x112   :  { %v276_v40 = vmax.f32 %v225_v35, 0.0  ;;  %v275_v58 = vmax.f32 %v266_v53, 0.0  ;;  %v270_v59 = vadd.f32 %v269_v57, %v92_v41  ;;  %v1730_v30 = vld [vmem:[#allocation5 + $0x304] ss:$16 sps:$4 sm:$0xff]   ;;  %v1728_v33 = vld [vmem:[#allocation5 + $0x300] ss:$16 sps:$4 sm:$0xff]  }
 0x113   :  { %v277_v43 = vmax.f32 %v227_v37, 0.0  ;;  %v278_v62 = vmax.f32 %v268_v56, 0.0  ;;  %v1731_v34 = vld [vmem:[#allocation5 + $0x308] ss:$16 sps:$4 sm:$0xff]   ;;  %v1736_v35 = vld [vmem:[#allocation5 + $0x324] ss:$16 sps:$4 sm:$0xff]  }
 0x114   :  { %v280_v44 = vpack.c.bf16 %v276_v40, %v272_v39  ;;  %v279_v1 = vmax.f32 %v270_v59, 0.0  ;;  %v1739_v36 = vld [vmem:[#allocation5 + $0x32c] ss:$16 sps:$4 sm:$0xff]   ;;  %v1734_v37 = vld [vmem:[#allocation5 + $0x320] ss:$16 sps:$4 sm:$0xff]  }
 0x115   :  { %v281_v46 = vpack.c.bf16 %v277_v43, %v273_v42  ;;  %v1920_v2 = vpack.c.bf16 %v278_v62, %v274_v55  ;;  %v1737_v38 = vld [vmem:[#allocation5 + $0x328] ss:$16 sps:$4 sm:$0xff]   ;;  %v1742_v39 = vld [vmem:[#allocation5 + $0x344] ss:$16 sps:$4 sm:$0xff]   ;;  %v1745_v40 = vld [vmem:[#allocation5 + $0x34c] ss:$16 sps:$4 sm:$0xff]  }
 0x116   :  { %v283_v3 = vpack.c.bf16 %v279_v1, %v275_v58  ;;  %v1740_v41 = vld [vmem:[#allocation5 + $0x340] ss:$16 sps:$4 sm:$0xff]   ;;  %v1743_v42 = vld [vmem:[#allocation5 + $0x348] ss:$16 sps:$4 sm:$0xff]   ;;  %v1748_v43 = vld [vmem:[#allocation5 + $0x364] ss:$16 sps:$4 sm:$0xff]  }
 0x117   :  { %1106 = vmatprep.mubr.bf16.mxu0 %v281_v46  ;;  %1192 = vmatprep.mubr.bf16.mxu1 %v281_v46  ;;  %v1749_v46 = vld [vmem:[#allocation5 + $0x368] ss:$16 sps:$4 sm:$0xff]   ;;  %v1752_v49 = vld [vmem:[#allocation5 + $0x380] ss:$16 sps:$4 sm:$0xff]   ;;  %v1766_v55 = vld [vmem:[#allocation5 + $0x3c4] ss:$16 sps:$4 sm:$0xff]  }
 0x118   :  { %1107 = vmatmul.mubr.bf16.vlgmr.msra.gmra.mrb[4].mxu0 %v280_v44  ;;  %1193 = vmatmul.mubr.bf16.vlgmr.msra.gmra.mrb[4].mxu1 %v280_v44  ;;  %v1751_v44 = vld [vmem:[#allocation5 + $0x36c] ss:$16 sps:$4 sm:$0xff]   ;;  %v1755_v50 = vld [vmem:[#allocation5 + $0x388] ss:$16 sps:$4 sm:$0xff]   ;;  %v1758_v53 = vld [vmem:[#allocation5 + $0x3a0] ss:$16 sps:$4 sm:$0xff]  }
 0x119   :  { %1118 = vmatpush1.bf16.msra.mxu0 %v1680_v47  ;;  %1204 = vmatpush1.bf16.msra.mxu1 %v1683_v48  ;;  %v1754_v47 = vld [vmem:[#allocation5 + $0x384] ss:$16 sps:$4 sm:$0xff]   ;;  %v1757_v48 = vld [vmem:[#allocation5 + $0x38c] ss:$16 sps:$4 sm:$0xff]   ;;  %v1761_v54 = vld [vmem:[#allocation5 + $0x3a8] ss:$16 sps:$4 sm:$0xff]  }
 0x11a   :  { %1119 = vmatprep.subr.bf16.mxu0 %v1688_v51  ;;  %1205 = vmatprep.subr.bf16.mxu1 %v1691_v52  ;;  %v1760_v51 = vld [vmem:[#allocation5 + $0x3a4] ss:$16 sps:$4 sm:$0xff]   ;;  %v1763_v52 = vld [vmem:[#allocation5 + $0x3ac] ss:$16 sps:$4 sm:$0xff]   ;;  %v1764_v57 = vld [vmem:[#allocation5 + $0x3c0] ss:$16 sps:$4 sm:$0xff]  }
 0x11b   :  { %1149 = vmatprep.mubr.bf16.mxu0 %v283_v3  ;;  %1235 = vmatprep.mubr.bf16.mxu1 %v283_v3  ;;  %v1769_v56 = vld [vmem:[#allocation5 + $0x3cc] ss:$16 sps:$4 sm:$0xff]   ;;  %v1767_v58 = vld [vmem:[#allocation5 + $0x3c8] ss:$16 sps:$4 sm:$0xff]   ;;  %v1772_v59 = vld [vmem:[#allocation5 + $0x3e4] ss:$16 sps:$4 sm:$0xff]  }
 0x11c   :  { %v1773_v62 = vld [vmem:[#allocation5 + $0x3e8] ss:$16 sps:$4 sm:$0xff]   ;;  %v1533_v3 = vld.sshfl [vmem:[%s1947_s5] sm:$0x33 pattern:$0x75316420] }
 0x11d   :  { %1120 = vmatpush1.bf16.msra.mxu0 %v1686_v60  ;;  %1206 = vmatpush1.bf16.msra.mxu1 %v1689_v61  ;;  %v1775_v60 = vld [vmem:[#allocation5 + $0x3ec] ss:$16 sps:$4 sm:$0xff]   ;;  %v1770_v61 = vld [vmem:[#allocation5 + $0x3e0] ss:$16 sps:$4 sm:$0xff]  }
 0x11e   :  { %1121 = vmatprep.subr.bf16.mxu0 %v1694_v63  ;;  %1207 = vmatprep.subr.bf16.mxu1 %v1697_v0  ;;  %v1829_v63 = vmov 1966171168  }
 0x11f   :  { %v1279_v0 = vunpack.c.l.s4 %v1829_v63 }
 0x121   :  { %1122 = vmatpush1.bf16.msra.mxu0 %v1692_v4  ;;  %1208 = vmatpush1.bf16.msra.mxu1 %v1695_v5  ;;  %v1280_v1 = vunpack.c.0.s8 %v1279_v0  ;;  %v1277_v4 = vcombine.high %v1533_v3, %v1533_v3 }
 0x122   :  { %1123 = vmatprep.subr.bf16.mxu0 %v1700_v6  ;;  %1209 = vmatprep.subr.bf16.mxu1 %v1703_v7 }
 0x123   :  { %v1283_v5 = vsub.s32 %v1280_v1, %v1902_v22 }
 0x125   :  { %1124 = vmatpush1.bf16.msra.mxu0 %v1698_v8  ;;  %1210 = vmatpush1.bf16.msra.mxu1 %v1701_v9  ;;  %v1291_v6 = vrot.slane %v1277_v4, %v1283_v5  ;;  %v1284_v7 = vrot.slane %v1533_v3, %v1283_v5  ;;  %v1259_v9 = vld [vmem:[#allocation2] sm:$0x1] }
 0x126   :  { %1125 = vmatprep.subr.bf16.mxu0 %v1706_v10  ;;  %1211 = vmatprep.subr.bf16.mxu1 %v1709_v11 }
 0x127   :  { %v1293_v8 = vcombine.high %v1291_v6, %v1291_v6  ;;  %1262 = vperm.xlu0 %1558, %v1259_v9  }
 0x129   :  { %1126 = vmatpush1.bf16.msra.mxu0 %v1704_v12  ;;  %1212 = vmatpush1.bf16.msra.mxu1 %v1707_v13 }
 0x12a   :  { %1127 = vmatprep.subr.bf16.mxu0 %v1712_v14  ;;  %1213 = vmatprep.subr.bf16.mxu1 %v1715_v15 }
 0x12d   :  { %1128 = vmatpush1.bf16.msra.mxu0 %v1710_v16  ;;  %1214 = vmatpush1.bf16.msra.mxu1 %v1713_v17 }
 0x12e   :  { %1129 = vmatprep.subr.bf16.mxu0 %v1718_v18  ;;  %1215 = vmatprep.subr.bf16.mxu1 %v1721_v19 }
 0x131   :  { %1130 = vmatpush1.bf16.msra.mxu0 %v1716_v20  ;;  %1216 = vmatpush1.bf16.msra.mxu1 %v1719_v21 }
 0x132   :  { %1131 = vmatprep.subr.bf16.mxu0 %v1724_v24  ;;  %1217 = vmatprep.subr.bf16.mxu1 %v1727_v26 }
 0x135   :  { %1132 = vmatpush1.bf16.msra.mxu0 %v1722_v27  ;;  %1218 = vmatpush1.bf16.msra.mxu1 %v1725_v28 }
 0x136   :  { %1133 = vmatprep.subr.bf16.mxu0 %v1730_v30  ;;  %1219 = vmatprep.subr.bf16.mxu1 %v1733_v31 }
 0x139   :  { %1134 = vmatpush1.bf16.msra.mxu0 %v1728_v33  ;;  %1220 = vmatpush1.bf16.msra.mxu1 %v1731_v34 }
 0x13a   :  { %1135 = vmatprep.subr.bf16.mxu0 %v1736_v35  ;;  %1221 = vmatprep.subr.bf16.mxu1 %v1739_v36 }
 0x13d   :  { %1136 = vmatpush1.bf16.msra.mxu0 %v1734_v37  ;;  %1222 = vmatpush1.bf16.msra.mxu1 %v1737_v38 }
 0x13e   :  { %1137 = vmatprep.subr.bf16.mxu0 %v1742_v39  ;;  %1223 = vmatprep.subr.bf16.mxu1 %v1745_v40 }
 0x141   :  { %1138 = vmatpush1.bf16.msra.mxu0 %v1740_v41  ;;  %1224 = vmatpush1.bf16.msra.mxu1 %v1743_v42 }
 0x142   :  { %1139 = vmatprep.subr.bf16.mxu0 %v1748_v43  ;;  %1225 = vmatprep.subr.bf16.mxu1 %v1751_v44  ;;  %v1292_v43 = vcombine.high %v1284_v7, %v1284_v7 }
 0x145   :  { %1140 = vmatpush1.bf16.msra.mxu0 %v1746_v45  ;;  %1226 = vmatpush1.bf16.msra.mxu1 %v1749_v46 }
 0x146   :  { %1141 = vmatprep.subr.bf16.mxu0 %v1754_v47  ;;  %1227 = vmatprep.subr.bf16.mxu1 %v1757_v48 }
 0x149   :  { %1142 = vmatpush1.bf16.msra.mxu0 %v1752_v49  ;;  %1228 = vmatpush1.bf16.msra.mxu1 %v1755_v50 }
 0x14a   :  { %1143 = vmatprep.subr.bf16.mxu0 %v1760_v51  ;;  %1229 = vmatprep.subr.bf16.mxu1 %v1763_v52 }
 0x14d   :  { %1144 = vmatpush1.bf16.msra.mxu0 %v1758_v53  ;;  %1230 = vmatpush1.bf16.msra.mxu1 %v1761_v54 }
 0x14e   :  { %1145 = vmatprep.subr.bf16.mxu0 %v1766_v55  ;;  %1231 = vmatprep.subr.bf16.mxu1 %v1769_v56 }
 0x151   :  { %1146 = vmatpush1.bf16.msra.mxu0 %v1764_v57  ;;  %1232 = vmatpush1.bf16.msra.mxu1 %v1767_v58 }
 0x152   :  { %1147 = vmatprep.subr.bf16.mxu0 %v1772_v59  ;;  %1233 = vmatprep.subr.bf16.mxu1 %v1775_v60 }
 0x155   :  { %1148 = vmatpush1.bf16.msra.mxu0 %v1770_v61  ;;  %1234 = vmatpush1.bf16.msra.mxu1 %v1773_v62 }
 0x158   :  { %1150 = vmatmul.mubr.bf16.vlgmr.msra.gmra.mrb[4].mxu0 %v1920_v2  ;;  %1236 = vmatmul.mubr.bf16.vlgmr.msra.gmra.mrb[4].mxu1 %v1920_v2  ;;  %v412_v2 = vld [vmem:[%s1946_s4] sm:$0xf] }
 0x159   :  { %1330 = vmatprep.mubr.bf16.mxu1 %v1291_v6  ;;  %1370 = vmatprep.mubr.bf16.mxu0 %v1293_v8  ;;  %v417_v10 = vrot.slane %v412_v2, %v1905_v23  ;;  %v425_v11 = vrot.slane %v412_v2, %v87_v29  ;;  %v421_v12 = vrot.slane %v412_v2, %v83_v25 }
 0x15a   :  { %v429_v13 = vrot.slane %v412_v2, %v91_v32 }
 0x1a6   :  { %v1263_v44 = vpop.permute.xlu0 %1262 }
 0x1a7   :  { %v1268_v45 = vrot.slane %v1263_v44, %v1905_v23 }
 0x22b   :  { %v1151_v14 = vpop.f32.mrb[4].mxu0  ;;  %v1237_v15 = vpop.f32.mrb[4].mxu1 }
 0x22c   :  { %v1534_v16 = vadd.f32 %v1151_v14, %v417_v10  ;;  %v1538_v17 = vadd.f32 %v1237_v15, %v425_v11  ;;  %v1153_v18 = vpop.f32.mrb[5].mxu0  ;;  %v1239_v19 = vpop.f32.mrb[5].mxu1 }
 0x22d   :  { %v1535_v20 = vadd.f32 %v1153_v18, %v421_v12  ;;  %v1539_v21 = vadd.f32 %v1239_v19, %v429_v13  ;;  %v1155_v24 = vpop.f32.mrb[6].mxu0  ;;  %v1241_v26 = vpop.f32.mrb[6].mxu1 }
 0x22e   :  { %v1536_v27 = vadd.f32 %v1155_v24, %v417_v10  ;;  %v1540_v28 = vadd.f32 %v1241_v26, %v425_v11  ;;  %v1157_v30 = vpop.f32.mrb[7].mxu0  ;;  %v1243_v29 = vpop.f32.mrb[7].mxu1  ;;  %v1246_v25 = vmax.f32 %v1534_v16, 0.0  ;;  %v1248_v34 = vmax.f32 %v1538_v17, 0.0 }
 0x22f   :  { %v1537_v31 = vadd.f32 %v1157_v30, %v421_v12  ;;  %v1541_v33 = vadd.f32 %v1243_v29, %v429_v13  ;;  %v1247_v35 = vmax.f32 %v1535_v20, 0.0  ;;  %v1249_v36 = vmax.f32 %v1539_v21, 0.0 }
 0x230   :  { %v1250_v22 = vmax.f32 %v1536_v27, 0.0  ;;  %v1252_v32 = vmax.f32 %v1540_v28, 0.0 }
 0x231   :  { %v1251_v37 = vmax.f32 %v1537_v31, 0.0  ;;  %v1253_v38 = vmax.f32 %v1541_v33, 0.0 }
 0x232   :  { %v1254_v39 = vpack.c.bf16 %v1250_v22, %v1246_v25  ;;  %v1256_v40 = vpack.c.bf16 %v1252_v32, %v1248_v34 }
 0x233   :  { %v1255_v41 = vpack.c.bf16 %v1251_v37, %v1247_v35  ;;  %v1257_v42 = vpack.c.bf16 %v1253_v38, %v1249_v36 }
 0x235   :  { %1298 = vmatprep.subr.bf16.mxu1 %v1255_v41  ;;  %1338 = vmatprep.subr.bf16.mxu0 %v1257_v42 }
 0x236   :  { %1299 = vmatpush1.bf16.xpose.msra.mxu1 %v1254_v39  ;;  %1339 = vmatpush1.bf16.xpose.msra.mxu0 %v1256_v40 }
 0x23d   :  { %1331 = vmatmul.mubr.bf16.vlgmr.msra.gmra.mrb[8].mxu1 %v1284_v7  ;;  %1371 = vmatmul.mubr.bf16.vlgmr.msra.gmra.mrb[8].mxu0 %v1292_v43 }
 0x310   :  { %v1332_v46 = vpop.f32.mrb[8].mxu1  ;;  %v1372_v47 = vpop.f32.mrb[8].mxu0 }
 0x311   :  { %v1333_v48 = vadd.f32 %v1332_v46, %v1268_v45  ;;  %v1334_v49 = vpop.f32.mrb[9].mxu1  ;;  %v1374_v50 = vpop.f32.mrb[9].mxu0 }
 0x312   :  { %v1335_v51 = vpop.f32.mrb[10].mxu1  ;;  %v1375_v52 = vpop.f32.mrb[10].mxu0 }
 0x313   :  { %v1373_v53 = vadd.f32 %v1372_v47, %v1333_v48  ;;  %v1336_v54 = vpop.f32.mrb[11].mxu1  ;;  %v1376_v55 = vpop.f32.mrb[11].mxu0 }
 0x315   :  { %1379 = vst.msk [vmem:[%s1949_s7] sm:$0x1] %vm1378_vm1, %v1373_v53 }
 0x316   :  { %1384 = vsyncpa [#allocation4], 1 }
 0x317   :  { %1385 = vsyncpa [#allocation6], 1 }

</bundles_post_ra>
